<compile_context>
chip_gen: v7x
topology: tpu7x:2x2x1
jax: 0.10.0
libtpu: 0.0.40
codegen_flags: <defaults>
</compile_context>

<pallas_src>
import functools

import numpy as np
import jax
import jax.numpy as jnp
from jax.experimental import pallas as pl
from jax.experimental.pallas import tpu as pltpu


def _round_up(x, m):
    return (x + m - 1) // m * m


def _choose_tile(M, cap):
    """Lane-tile size: multiple of 128, as large as the cap, but with >=2 grid
    steps whenever M allows it so ("parallel",) can shard across v7x's 2 TCs."""
    m128 = _round_up(M, 128)
    t = min(cap, m128)
    if m128 >= 256 and m128 // t < 2:
        t = max(128, (m128 // 2) // 128 * 128)
    return t


# ----------------------------------------------------------------------------
# Pallas kernel: lane-major GEMM with fused epilogue
#   acc(C1, tm) = W1(C1, K) @ X(K, tm)            (bf16 in, f32 accumulate)
#   acc         = acc * scale + shift  [+ ReLU]   (per-output-channel, f32)
#   acc(C2, tm) = W2(C2, C1) @ acc + b2           (optional fused 1x1 conv)
#   store bf16 (intermediates) or f32 (final).
# ----------------------------------------------------------------------------
def _gemm_fused_kernel(*refs, relu, has_scale, fused2):
    idx = 0
    w1_ref = refs[idx]; idx += 1
    x_ref = refs[idx]; idx += 1
    scale_ref = None
    if has_scale:
        scale_ref = refs[idx]; idx += 1
    shift_ref = refs[idx]; idx += 1
    w2_ref = b2_ref = None
    if fused2:
        w2_ref = refs[idx]; idx += 1
        b2_ref = refs[idx]; idx += 1
    o_ref = refs[idx]

    acc = jnp.dot(w1_ref[...], x_ref[...], preferred_element_type=jnp.float32)
    if has_scale:
        acc = acc * scale_ref[...]          # (C1, 1) broadcast over lanes
    acc = acc + shift_ref[...]
    if relu:
        acc = jnp.maximum(acc, 0.0)
    if fused2:                              # fused 1x1 conv + bias
        acc = jnp.dot(w2_ref[...], acc.astype(jnp.bfloat16),
                      preferred_element_type=jnp.float32) + b2_ref[...]
    o_ref[...] = acc.astype(o_ref.dtype)


def fused_gemm(w1, colT, scale, shift, w2=None, b2=None, relu=False,
               out_dtype=jnp.bfloat16, tm_cap=4096):
    """out(C_out, M) with fused scale/shift/ReLU and optional second 1x1 conv."""
    C1, K = w1.shape
    K2, M = colT.shape
    assert K == K2
    fused2 = w2 is not None
    C_out = w2.shape[0] if fused2 else C1

    tm = _choose_tile(M, tm_cap)
    M_pad = _round_up(M, tm)
    x_bf = colT.astype(jnp.bfloat16)
    if M_pad != M:
        x_bf = jnp.pad(x_bf, ((0, 0), (0, M_pad - M)))

    in_arrays = [w1.astype(jnp.bfloat16), x_bf]
    in_specs = [
        pl.BlockSpec((C1, K), lambda i: (0, 0)),   # weight resident in VMEM
        pl.BlockSpec((K, tm), lambda i: (0, i)),   # activation tile over M
    ]
    has_scale = scale is not None
    if has_scale:
        in_arrays.append(jnp.asarray(scale, jnp.float32).reshape(C1, 1))
        in_specs.append(pl.BlockSpec((C1, 1), lambda i: (0, 0)))
    in_arrays.append(jnp.asarray(shift, jnp.float32).reshape(C1, 1))
    in_specs.append(pl.BlockSpec((C1, 1), lambda i: (0, 0)))
    if fused2:
        in_arrays.append(w2.astype(jnp.bfloat16))
        in_specs.append(pl.BlockSpec((C_out, C1), lambda i: (0, 0)))
        in_arrays.append(jnp.asarray(b2, jnp.float32).reshape(C_out, 1))
        in_specs.append(pl.BlockSpec((C_out, 1), lambda i: (0, 0)))

    kernel = functools.partial(_gemm_fused_kernel, relu=relu,
                               has_scale=has_scale, fused2=fused2)

    flops = 2 * C1 * K * M_pad + (2 * C_out * C1 * M_pad if fused2 else 0)
    bytes_accessed = int(sum(int(a.size) * a.dtype.itemsize for a in in_arrays)
                         + C_out * M_pad * jnp.dtype(out_dtype).itemsize)
    cost = pl.CostEstimate(flops=flops, transcendentals=0,
                           bytes_accessed=bytes_accessed)

    out = pl.pallas_call(
        kernel,
        out_shape=jax.ShapeDtypeStruct((C_out, M_pad), out_dtype),
        grid=(M_pad // tm,),
        in_specs=in_specs,
        out_specs=pl.BlockSpec((C_out, tm), lambda i: (0, i)),
        compiler_params=pltpu.CompilerParams(
            dimension_semantics=("parallel",),
            vmem_limit_bytes=32 * 1024 * 1024,
        ),
        cost_estimate=cost,
    )(*in_arrays)

    if M_pad != M:
        out = out[:, :M]
    return out


# ----------------------------------------------------------------------------
# im2col glue (bf16, channels-outermost) and conv wrappers.
# ----------------------------------------------------------------------------
def _im2col_cf(x_cf, kh, kw, stride, padding):
    """x (Cin,N,H,W) -> colT (Cin*kh*kw, N*Ho*Wo), rows in torch flatten order."""
    Cin, N, H, W = x_cf.shape
    Ho = (H + 2 * padding - kh) // stride + 1
    Wo = (W + 2 * padding - kw) // stride + 1
    if kh == 1 and kw == 1 and padding == 0 and stride == 1:
        return x_cf.reshape(Cin, N * H * W), Ho, Wo
    xp = jnp.pad(x_cf, ((0, 0), (0, 0), (padding, padding), (padding, padding)))
    taps = []
    for i in range(kh):
        for j in range(kw):
            taps.append(
                xp[:, :, i:i + Ho * stride:stride, j:j + Wo * stride:stride])
    colT = jnp.stack(taps, axis=1).reshape(Cin * kh * kw, N * Ho * Wo)
    return colT, Ho, Wo


def conv2d_cf(x_cf, weight, bias, stride=1, padding=0, relu=False,
              out_dtype=jnp.bfloat16):
    """Conv2d in channels-outermost layout: (Cin,N,H,W) -> (Cout,N,Ho,Wo)."""
    Cin, N, H, W = x_cf.shape
    Cout, Cin2, kh, kw = weight.shape
    assert Cin == Cin2
    colT, Ho, Wo = _im2col_cf(x_cf.astype(jnp.bfloat16), kh, kw, stride, padding)
    out = fused_gemm(weight.reshape(Cout, Cin * kh * kw), colT,
                     None, bias, relu=relu, out_dtype=out_dtype)
    return out.reshape(Cout, N, Ho, Wo)


def fcn_head_cf(feat_cf, w1, bn_scale, bn_shift, w2, b2,
                out_dtype=jnp.bfloat16):
    """FCNHead: conv3x3(no bias) + BN(eval, folded) + ReLU + Dropout(eval=id)
    + conv1x1 + bias, all fused into ONE Pallas GEMM."""
    Cin, N, H, W = feat_cf.shape
    inter = w1.shape[0]
    ncls = w2.shape[0]
    colT, Ho, Wo = _im2col_cf(feat_cf.astype(jnp.bfloat16), 3, 3, 1, 1)
    out = fused_gemm(w1.reshape(inter, Cin * 9), colT, bn_scale, bn_shift,
                     w2=w2.reshape(ncls, inter), b2=b2, relu=True,
                     out_dtype=out_dtype)
    return out.reshape(ncls, N, Ho, Wo)


# ----------------------------------------------------------------------------
# Bilinear upsample (align_corners=False) as one lane-dense GEMM:
#   out(C*N, out_h*out_w) = in(C*N, h*w) @ kron(A_h, A_w)^T
# ----------------------------------------------------------------------------
def _bilinear_matrix(in_size, out_size):
    # F.interpolate(..., mode='bilinear', align_corners=False) weights
    scale = in_size / out_size
    dst = np.arange(out_size, dtype=np.float64)
    src = np.clip((dst + 0.5) * scale - 0.5, 0.0, in_size - 1)
    i0 = np.floor(src).astype(np.int64)
    i1 = np.minimum(i0 + 1, in_size - 1)
    w1 = src - i0
    w0 = 1.0 - w1
    A = np.zeros((out_size, in_size), dtype=np.float64)
    A[np.arange(out_size), i0] += w0
    A[np.arange(out_size), i1] += w1
    return A


def _upsample_kernel(x_ref, bt_ref, o_ref):
    o_ref[...] = jnp.dot(x_ref[...], bt_ref[...],
                         preferred_element_type=jnp.float32)


def bilinear_upsample_cf(x_cf, out_h, out_w, tn_cap=4096):
    C, N, h, w = x_cf.shape
    if (h, w) == (out_h, out_w):
        return x_cf.astype(jnp.float32)
    A_h = _bilinear_matrix(h, out_h)                       # (out_h, h)
    A_w = _bilinear_matrix(w, out_w)                       # (out_w, w)
    Bt = np.kron(A_h, A_w).T.astype(np.float32)            # (h*w, out_h*out_w)
    Bt = jnp.asarray(Bt).astype(jnp.bfloat16)

    G = C * N
    HW = out_h * out_w
    x2 = x_cf.reshape(G, h * w).astype(jnp.bfloat16)       # trivial reshape

    tn = _choose_tile(HW, tn_cap)
    HW_pad = _round_up(HW, tn)
    if HW_pad != HW:
        Bt = jnp.pad(Bt, ((0, 0), (0, HW_pad - HW)))

    y = pl.pallas_call(
        _upsample_kernel,
        out_shape=jax.ShapeDtypeStruct((G, HW_pad), jnp.float32),
        grid=(HW_pad // tn,),
        in_specs=[
            pl.BlockSpec((G, h * w), lambda i: (0, 0)),    # images resident
            pl.BlockSpec((h * w, tn), lambda i: (0, i)),   # kron tile over HW
        ],
        out_specs=pl.BlockSpec((G, tn), lambda i: (0, i)),
        compiler_params=pltpu.CompilerParams(
            dimension_semantics=("parallel",),
            vmem_limit_bytes=32 * 1024 * 1024,
        ),
    )(x2, Bt)

    if HW_pad != HW:
        y = y[:, :HW]
    return y.reshape(C, N, out_h, out_w)


# ----------------------------------------------------------------------------
# FCN32s: synthetic encoder + FCNHead decoder + bilinear resize to input size
# ----------------------------------------------------------------------------
def init_params(key, in_channels=3, num_classes=4):
    ks = jax.random.split(key, 12)
    enc_c1, enc_c2 = 16, 32
    inter = enc_c2 // 4  # FCNHead inter_channels = in_channels // 4

    def rnd(k, shape, s=0.1):
        return jax.random.normal(k, shape, jnp.float32) * s

    return {
        # encoder conv1: 3x3 stride 2 pad 1, bias, ReLU
        "e1_w": rnd(ks[0], (enc_c1, in_channels, 3, 3)),
        "e1_b": rnd(ks[1], (enc_c1,)),
        # encoder conv2: 3x3 stride 2 pad 1, bias, ReLU
        "e2_w": rnd(ks[2], (enc_c2, enc_c1, 3, 3)),
        "e2_b": rnd(ks[3], (enc_c2,)),
        # FCNHead conv 3x3, no bias
        "h1_w": rnd(ks[4], (inter, enc_c2, 3, 3)),
        # FCNHead BatchNorm (eval mode)
        "bn_gamma": 1.0 + 0.1 * jax.random.normal(ks[5], (inter,), jnp.float32),
        "bn_beta": rnd(ks[6], (inter,)),
        "bn_mean": rnd(ks[7], (inter,)),
        "bn_var": jnp.abs(rnd(ks[8], (inter,))) + 0.5,
        # FCNHead final 1x1 conv, bias
        "h2_w": rnd(ks[9], (num_classes, inter, 1, 1)),
        "h2_b": rnd(ks[10], (num_classes,)),
    }


def fcn32s_forward(params, x):
    input_h, input_w = x.shape[-2], x.shape[-1]
    # channels-outermost bf16 activations; one transpose at entry, one at exit
    x_cf = jnp.transpose(x, (1, 0, 2, 3)).astype(jnp.bfloat16)

    # ---- encoder (returns list of features; decoder uses the last one) ----
    f1 = conv2d_cf(x_cf, params["e1_w"], params["e1_b"],
                   stride=2, padding=1, relu=True)
    f2 = conv2d_cf(f1, params["e2_w"], params["e2_b"],
                   stride=2, padding=1, relu=True)
    features = [f1, f2]

    # ---- FCNHead decoder: fully fused (conv3x3+BN+ReLU+dropout(eval)+conv1x1)
    feat = features[-1]
    eps = 1e-5
    bn_scale = params["bn_gamma"] * jax.lax.rsqrt(params["bn_var"] + eps)
    bn_shift = params["bn_beta"] - params["bn_mean"] * bn_scale
    need_up = (feat.shape[-2], feat.shape[-1]) != (input_h, input_w)
    out_cf = fcn_head_cf(feat, params["h1_w"], bn_scale, bn_shift,
                         params["h2_w"], params["h2_b"],
                         out_dtype=jnp.bfloat16 if need_up else jnp.float32)

    # ---- F.interpolate(..., mode='bilinear', align_corners=False) ----
    if need_up:
        out_cf = bilinear_upsample_cf(out_cf, input_h, input_w)

    out = jnp.transpose(out_cf.astype(jnp.float32), (1, 0, 2, 3))  # NCHW
    return out, None


if __name__ == "__main__":
    key = jax.random.PRNGKey(0)
    k_param, k_x = jax.random.split(key)

    N, Cin, H, W = 2, 3, 16, 16
    num_classes = 4

    params = init_params(k_param, in_channels=Cin, num_classes=num_classes)
    x = jax.random.normal(k_x, (N, Cin, H, W), jnp.float32)

    out, aux = fcn32s_forward(params, x)
    out = jax.block_until_ready(out)

    assert out.shape == (N, num_classes, H, W), out.shape
    assert aux is None
    assert bool(jnp.all(jnp.isfinite(out)))
    print("KERNEL_OK")
</pallas_src>

<mosaic_0001>
module attributes {stable_mosaic.version = 11 : i64} {
  func.func @_gemm_fused_kernel(%arg0: i32, %arg1: memref<16x27xbf16, #tpu.memory_space<vmem>>, %arg2: memref<27x128xbf16, #tpu.memory_space<vmem>>, %arg3: memref<16x1xf32, #tpu.memory_space<vmem>>, %arg4: memref<16x128xbf16, #tpu.memory_space<vmem>>) attributes {dimension_semantics = [#tpu.dimension_semantics<parallel>], iteration_bounds = array<i64: 1>, scalar_prefetch = 0 : i64, scratch_operands = 0 : i64, tpu.core_type = #tpu.core_type<tc>, window_params = [{pipeline_mode = #tpu.pipeline_mode<synchronous>, transform_indices = @transform_0, window_bounds = array<i64: 16, 27>}, {transform_indices = @transform_1, window_bounds = array<i64: 27, 128>}, {pipeline_mode = #tpu.pipeline_mode<synchronous>, transform_indices = @transform_2, window_bounds = array<i64: 16, 1>}, {transform_indices = @transform_3, window_bounds = array<i64: 16, 128>}]} {
    %c0 = arith.constant 0 : index
    %c0_0 = arith.constant 0 : index
    %0 = vector.load %arg1[%c0, %c0_0] : memref<16x27xbf16, #tpu.memory_space<vmem>>, vector<16x27xbf16>
    %c0_1 = arith.constant 0 : index
    %c0_2 = arith.constant 0 : index
    %1 = vector.load %arg2[%c0_1, %c0_2] : memref<27x128xbf16, #tpu.memory_space<vmem>>, vector<27x128xbf16>
    %cst = arith.constant dense<0.000000e+00> : vector<16x128xf32>
    %2 = tpu.matmul %0, %1, %cst {dimension_numbers = #tpu.dot_dimension_numbers<[1], [0], [0], [1], [0, 0, 1, 1], [], []>} : vector<16x27xbf16>, vector<27x128xbf16>, vector<16x128xf32> -> vector<16x128xf32>
    %c0_3 = arith.constant 0 : index
    %c0_4 = arith.constant 0 : index
    %3 = vector.load %arg3[%c0_3, %c0_4] : memref<16x1xf32, #tpu.memory_space<vmem>>, vector<16x1xf32>
    %4 = vector.broadcast %3 : vector<16x1xf32> to vector<16x128xf32>
    %5 = arith.addf %2, %4 : vector<16x128xf32>
    %cst_5 = arith.constant 0.000000e+00 : f32
    %6 = vector.broadcast %cst_5 : f32 to vector<16x128xf32>
    %7 = arith.maximumf %5, %6 : vector<16x128xf32>
    %8 = arith.truncf %7 : vector<16x128xf32> to vector<16x128xbf16>
    %c0_6 = arith.constant 0 : index
    %c0_7 = arith.constant 0 : index
    %9 = vector.load %arg4[%c0_6, %c0_7] : memref<16x128xbf16, #tpu.memory_space<vmem>>, vector<16x128xbf16>
    tpu.vector_store %arg4[%c0_6, %c0_7], %8 {strides = array<i32>} : memref<16x128xbf16, #tpu.memory_space<vmem>>, vector<16x128xbf16>,
    return
  }
  func.func @transform_0(%arg0: i32) -> (i32, i32) {
    %c0_i32 = arith.constant 0 : i32
    %c0_i32_0 = arith.constant 0 : i32
    %c0_i32_1 = arith.constant 0 : i32
    return %c0_i32, %c0_i32_0 : i32, i32
  }
  func.func @transform_1(%arg0: i32) -> (i32, i32) {
    %c0_i32 = arith.constant 0 : i32
    %c0_i32_0 = arith.constant 0 : i32
    return %c0_i32, %arg0 : i32, i32
  }
  func.func @transform_2(%arg0: i32) -> (i32, i32) {
    %c0_i32 = arith.constant 0 : i32
    %c0_i32_0 = arith.constant 0 : i32
    %c0_i32_1 = arith.constant 0 : i32
    return %c0_i32, %c0_i32_0 : i32, i32
  }
  func.func @transform_3(%arg0: i32) -> (i32, i32) {
    %c0_i32 = arith.constant 0 : i32
    %c0_i32_0 = arith.constant 0 : i32
    return %c0_i32, %arg0 : i32, i32
  }
}

</mosaic_0001>

<bundles_post_ra>
// kernel: tpu_custom_call.1
= control target key start
LH: loop header
LB: loop body
LE: loop exit
PB: predicated region body
PF: predicated region fallthrough
CT: control target
= control target key end

     0   :  { %8 = vsyncpa [#allocation3], 0  ;;  %s299_s0 = inlined_call_operand.hbm [shape: bf16[16,27], index: 0, kind: input, shape index: {}]   ;;  %s300_s1 = inlined_call_operand.vmem [shape: bf16[27,128], index: 1, kind: input, shape index: {}]   ;;  %s301_s2 = inlined_call_operand.vmem [shape: f32[16,1], index: 2, kind: input, shape index: {}]   ;;  %s302_s3 = inlined_call_operand.hbm [shape: bf16[16,128], index: 3, kind: output, shape index: {}]  }
   0x1   :  { %9 = vsyncpa [#allocation4], 0  ;;  %s229_s12 = smov [#allocation2]   ;;  %s181_s16 = scalar_lea.hbm %s299_s0, 128 }
   0x2   :  { %s15_s13 = sshll.u32 %s229_s12, 4  ;;  %p182_p0 = scmp.ne.s32.totalorder %s299_s0, %s181_s16  ;;  %s16_s13 = int_to_ptr.vmem [resolvable:$true] %s15_s13 }
   0x3   :  { %p185_p1 = scmp.lt.u32.totalorder %s181_s16, %s299_s0 }
   0x5   :  { %p187_p2 = pnand %p185_p1, %p182_p0 }
   0x7   :  { %190 = shalt.err (!%p187_p2)
}
   0x8   :  { %s191_s21 = scalar_lea.vmem %s16_s13, 128  ;;  %p196_p4 = scmp.lt.s32.totalorder %s16_s13, %s16_s13 }
   0x9   :  { %p192_p3 = scmp.ne.s32.totalorder %s16_s13, %s191_s21  ;;  %p197_p5 = scmp.lt.s32.totalorder %s191_s21, %s191_s21 }
   0xb   :  { %p198_p6 = por %p197_p5, %p196_p4 }
   0xd   :  { %p199_p7 = pnand %p198_p6, %p192_p3 }
   0xf   :  { %202 = shalt.err (!%p199_p7)
}
  0x10   :  { %s230_s22 = smov 64   ;;  %s231_s23 = smov 4  }
  0x11   :  { %21 = dma.hbm_to_vmem [thread:$0]  %s299_s0, 128, %s16_s13, [#allocation3], %s230_s22, %s230_s22, %s231_s23  }
  0x12   :  { %225 = dma.done.wait [#allocation3], 128  }
  0x13   :  { %226 = vsyncadd [#allocation3], 4294967168  ;;  %v232_v0 = vmov 0.0   ;;  %vm68_vm0 = vcmask 1044480   ;;  %vm233_vm1 = vmmov 0   ;;  %v234_v1 = vmov 0  }
  0x14   :  { %161 = vmatprep.subr.bf16.mxu0 %v232_v0  ;;  %165 = vmatprep.mubr.msk.bf16.mxu0 %vm233_vm1, %v232_v0  ;;  %vm69_vm2 = vcmask 1045504   ;;  %v235_v2 = vmov 65535   ;;  %v178_v4 = vld [vmem:[%s300_s1] sm:$0xff]   ;;  %v179_v6 = vld [vmem:[%s300_s1 + $0x8] sm:$0x3f]   ;;  %vm64_vm3 = vcmask 220160  }
  0x15   :  { %177 = vset.pattern.permute.xlu0 %v234_v1  ;;  %v70_v3 = vsel %vm68_vm0, 4294967295, %v235_v2  ;;  %162 = vmatpush3.bf16.msra.mxu0 %v178_v4  ;;  %v36_v8 = vld [vmem:[%s301_s2] sm:$0xff]  ;;  %v37_v10 = vld [vmem:[%s301_s2 + $0x8] sm:$0xff]  ;;  %s236_s1 = smov [#allocation5]  }
  0x16   :  { %v71_v5 = vsel %vm69_vm2, %v70_v3, 0  ;;  %163 = vmatprep.subr.bf16.mxu0 %v232_v0  ;;  %40 = vperm.xlu0 %177, %v36_v8   ;;  %v180_v9 = vld [vmem:[#allocation2] sm:$0xff]   ;;  %s133_s6 = sshll.u32 %s236_s1, 4  ;;  %s134_s6 = int_to_ptr.vmem [resolvable:$true] %s133_s6 }
  0x17   :  { %v73_v7 = vand.u32 %v179_v6, %v71_v5  ;;  %s203_s2 = scalar_lea.vmem %s134_s6, 128  ;;  %p208_p9 = scmp.lt.s32.totalorder %s134_s6, %s134_s6 }
  0x18   :  { %p204_p8 = scmp.ne.s32.totalorder %s134_s6, %s203_s2  ;;  %p209_p10 = scmp.lt.s32.totalorder %s203_s2, %s203_s2 }
  0x19   :  { %164 = vmatpush3.bf16.msra.mxu0 %v73_v7 }
  0x1a   :  { %45 = vperm.xlu0 %177, %v37_v10   ;;  %p210_p11 = por %p209_p10, %p208_p9 }
  0x1c   :  { %166 = vmatmul.mubr.msk.bf16.vlgmr.msra.gmra.mrb[0].mxu0 %vm64_vm3, %v180_v9  ;;  %p211_p12 = pnand %p210_p11, %p204_p8 }
  0x95   :  { %v41_v11 = vpop.permute.xlu0 %40 }
  0x99   :  { %v46_v15 = vpop.permute.xlu0 %45 }
  0xef   :  { %v109_v12 = vpop.f32.mrb[0].mxu0 }
  0xf0   :  { %v110_v13 = vadd.f32 %v109_v12, %v41_v11  ;;  %v167_v14 = vpop.f32.mrb[1].mxu0 }
  0xf1   :  { %v112_v16 = vpop.f32.mrb[2].mxu0 }
  0xf2   :  { %v113_v17 = vadd.f32 %v112_v16, %v46_v15  ;;  %v168_v18 = vpop.f32.mrb[3].mxu0  ;;  %v116_v19 = vmax.f32 %v110_v13, 0.0 }
  0xf4   :  { %v117_v20 = vmax.f32 %v113_v17, 0.0 }
  0xf6   :  { %v156_v21 = vpack.c.bf16 %v117_v20, %v116_v19 }
  0xf8   :  { %157 = vst [vmem:[#allocation5] sm:$0xff] %v156_v21  }
  0xf9   :  { %214 = shalt.err (!%p211_p12)
}
  0xfa   :  { %s215_s9 = scalar_lea.hbm %s302_s3, 128 }
  0xfb   :  { %p216_p13 = scmp.ne.s32.totalorder %s302_s3, %s215_s9  ;;  %p219_p0 = scmp.lt.u32.totalorder %s215_s9, %s302_s3 }
  0xfd   :  { %p221_p1 = pnand %p219_p0, %p216_p13 }
  0xff   :  { %224 = shalt.err (!%p221_p1)
}
 0x100   :  { %139 = dma.vmem_to_hbm [thread:$0]  %s134_s6, 128, %s302_s3, [#allocation4], %s230_s22, %s230_s22, %s231_s23  }
 0x101   :  { %227 = dma.done.wait [#allocation4], 128  }
 0x102   :  { %228 = vsyncadd [#allocation4], 4294967168 }
 0x103   :  { %143 = vsyncpa [#allocation3], 1 }
 0x104   :  { %144 = vsyncpa [#allocation4], 1 }

</bundles_post_ra>
